<compile_context>
chip_gen: v6e
topology: v6e:2x2x1
jax: 0.10.0
libtpu: 0.0.40
codegen_flags: <defaults>
</compile_context>

<pallas_src>
import jax
import jax.numpy as jnp
from jax import lax
from jax.experimental import pallas as pl
from jax.experimental.pallas import tpu as pltpu


def inv_bottleneck_kernel(x_ref, w1_ref, w2_ref, w3_ref, bias_ref, out_ref):
    B, H, WC = x_ref.shape
    M = B * H
    f32 = jnp.float32
    bf16 = jnp.bfloat16

    b1 = bias_ref[0:1, :]                                    # (1, WC) f32
    b2 = bias_ref[1:2, :]
    b3 = bias_ref[2:3, :]

    # ---- conv1 (1x1; BN1 scale pre-folded into w1) + bias + ReLU ----
    # MXU operands in bf16, f32 accumulation; elementwise stays f32 (v5e-safe).
    x_bf = x_ref[...].reshape(M, WC).astype(bf16)
    t1 = jnp.dot(x_bf, w1_ref[...], preferred_element_type=f32)
    t1 = jnp.maximum(t1 + b1, 0.0)

    # ---- conv2 (3x3, pad=1) as ONE im2col matmul (M, 3*WC) x (3*WC, WC) ----
    # W-direction zero padding is encoded in the banded w2 weight; H-direction
    # padding via XLU rolls + a per-image first/last-row mask.  Rolls wrap across
    # image boundaries, but exactly those rows are the ones being zeroed.
    rows = lax.broadcasted_iota(jnp.int32, (M, 1), 0) % H    # row index within image
    up = jnp.where(rows == 0, 0.0, pltpu.roll(t1, 1, axis=0))            # t1[h-1]
    down = jnp.where(rows == H - 1, 0.0, pltpu.roll(t1, M - 1, axis=0))  # t1[h+1]
    im = jnp.concatenate(
        [up.astype(bf16), t1.astype(bf16), down.astype(bf16)], axis=1)   # (M, 3*WC)
    t2 = jnp.dot(im, w2_ref[...], preferred_element_type=f32)
    t2 = jnp.maximum(t2 + b2, 0.0)

    # ---- conv3 (1x1; BN3 scale pre-folded) + bias ----
    t3 = jnp.dot(t2.astype(bf16), w3_ref[...], preferred_element_type=f32)
    t3 = t3 + b3

    # ---- residual add + ReLU ----
    # Identity re-read from VMEM at the point of use (not kept live across the
    # three matmuls), in full f32 precision.
    ident = x_ref[...].reshape(M, WC).astype(f32)
    out_ref[...] = jnp.maximum(t3 + ident, 0.0).reshape(B, H, WC).astype(out_ref.dtype)


def expand_inv_bottleneck_params(params, W, C, mxu_dtype=jnp.bfloat16):
    """One-time (model-load) expansion to the folded lane-dense (W*C) layout.

    1x1 convs -> block-diagonal (WC, WC); 3x3 conv -> banded (3*WC, WC) im2col
    weight (W-direction zero padding encoded in the band).  BN scales are folded
    into the output columns (exact per-output-channel scaling); only biases
    remain as a single (3, WC) f32 operand.  Weights are cast to `mxu_dtype`.
    """
    WC = W * C
    f32 = jnp.float32
    eye_w = jnp.eye(W, dtype=f32)

    def tile_c(p):                                           # (..,C) -> (WC,)
        return jnp.tile(p.reshape(C).astype(f32), W)

    s1, b1 = tile_c(params["s1"]), tile_c(params["b1"])
    s2, b2 = tile_c(params["s2"]), tile_c(params["b2"])
    s3, b3 = tile_c(params["s3"]), tile_c(params["b3"])

    w1big = jnp.einsum('ab,ij->aibj', eye_w, params["w1"].astype(f32)).reshape(WC, WC)
    w3big = jnp.einsum('ab,ij->aibj', eye_w, params["w3"].astype(f32)).reshape(WC, WC)

    # 3x3 conv: for each row tap kh, block (wi, wo) = w2[kh, wi - wo + 1] if
    # |wi - wo| <= 1 else 0 (out-of-range wi == W-direction zero padding).
    wi = jnp.arange(W)[:, None]
    wo = jnp.arange(W)[None, :]
    blocks = []
    for kh in range(3):
        acc = jnp.zeros((W, C, W, C), f32)
        for kw in range(3):
            sel = (wi - wo == (kw - 1)).astype(f32)          # (W, W) band mask
            acc = acc + jnp.einsum('ab,ij->aibj', sel, params["w2"][kh, kw].astype(f32))
        blocks.append(acc.reshape(WC, WC))
    w2big = jnp.concatenate(blocks, axis=0)                  # (3*WC, WC)

    # Fold BN scales (per output channel => per output column) into the weights.
    w1big = w1big * s1[None, :]
    w2big = w2big * s2[None, :]
    w3big = w3big * s3[None, :]

    bias = jnp.stack([b1, b2, b3], axis=0)                   # (3, WC) f32

    return dict(w1=w1big.astype(mxu_dtype),
                w2=w2big.astype(mxu_dtype),
                w3=w3big.astype(mxu_dtype),
                bias=bias)


def _choose_images_per_step(N, H, WC, weight_bytes,
                            target_rows=512, vmem_budget_bytes=24 * 1024 * 1024):
    """Images folded into one grid step (the matmul M dimension = b*H).

    Targets M >= target_rows to amortize per-step overhead / MXU fill-drain,
    keeps grid >= 2 when N >= 2 (both v7x TensorCores), and bounds the
    double-buffered VMEM footprint for v7x's 64 MiB part.
    """
    per_img_bytes = H * WC * 4                               # f32 image tile

    def fits(b):
        # 2 in + 2 out pipeline buffers + (double-buffered) resident weights.
        return 4 * b * per_img_bytes + 2 * weight_bytes <= vmem_budget_bytes

    b = max(1, min(N, max(1, target_rows // H)))
    if N >= 2:
        b = min(b, N // 2)                                   # grid >= 2 for v7x 2 TCs
    b = max(1, b)
    while b > 1 and (N % b != 0 or not fits(b)):
        b -= 1
    return b


def inv_bottleneck_pallas(x_nhwc, ep):
    """NHWC-native InvBottleneck (stride=1, Cin==Cout) with pre-expanded params `ep`."""
    N, H, W, C = x_nhwc.shape
    WC = W * C
    assert WC % 128 == 0, "lane-dense path assumes W*C is a multiple of 128"
    assert H % 8 == 0, "H must be a multiple of 8 for sublane-clean row folding"

    x = x_nhwc.reshape(N, H, WC)                             # layout-free fold

    weight_bytes = sum(int(ep[k].size) * ep[k].dtype.itemsize
                       for k in ("w1", "w2", "w3", "bias"))
    b_img = _choose_images_per_step(N, H, WC, weight_bytes)
    grid = (N // b_img,)

    img_spec = pl.BlockSpec((b_img, H, WC), lambda n: (n, 0, 0))

    def w_spec(shape):                                       # resident across the grid
        return pl.BlockSpec(shape, lambda n: (0,) * len(shape))

    out = pl.pallas_call(
        inv_bottleneck_kernel,
        out_shape=jax.ShapeDtypeStruct((N, H, WC), x.dtype),
        grid=grid,
        in_specs=[img_spec,
                  w_spec(ep["w1"].shape),
                  w_spec(ep["w2"].shape),
                  w_spec(ep["w3"].shape),
                  w_spec(ep["bias"].shape)],
        out_specs=img_spec,
        compiler_params=pltpu.CompilerParams(
            dimension_semantics=("parallel",),
            vmem_limit_bytes=32 * 1024 * 1024),
    )(x, ep["w1"], ep["w2"], ep["w3"], ep["bias"])

    return out.reshape(N, H, W, C)


# ----------------------- pure-JAX reference (for checking) -----------------------
def inv_bottleneck_ref(x_nhwc, params):
    dn = ("NHWC", "HWIO", "NHWC")
    C = x_nhwc.shape[-1]

    w1 = params["w1"].reshape(1, 1, C, C)
    t1 = lax.conv_general_dilated(x_nhwc, w1, (1, 1), "VALID", dimension_numbers=dn)
    t1 = jnp.maximum(t1 * params["s1"] + params["b1"], 0.0)

    t2 = lax.conv_general_dilated(t1, params["w2"], (1, 1), "SAME",
                                  dimension_numbers=dn)
    t2 = jnp.maximum(t2 * params["s2"] + params["b2"], 0.0)

    w3 = params["w3"].reshape(1, 1, C, C)
    t3 = lax.conv_general_dilated(t2, w3, (1, 1), "VALID", dimension_numbers=dn)
    t3 = t3 * params["s3"] + params["b3"]

    return jnp.maximum(t3 + x_nhwc, 0.0)


def make_params(key, C):
    ks = jax.random.split(key, 12)
    eps = 1e-5

    def bn_fold(kg, kb, km, kv):
        gamma = 1.0 + 0.1 * jax.random.normal(kg, (C,), jnp.float32)
        beta = 0.1 * jax.random.normal(kb, (C,), jnp.float32)
        rmean = 0.1 * jax.random.normal(km, (C,), jnp.float32)
        rvar = 1.0 + 0.1 * jax.random.uniform(kv, (C,), jnp.float32)
        scale = gamma / jnp.sqrt(rvar + eps)
        bias = beta - rmean * scale
        return scale.reshape(1, 1, 1, C), bias.reshape(1, 1, 1, C)

    # PyTorch weights are (Cout, Cin, kh, kw); stored here matmul-ready.
    w1 = 0.3 * jax.random.normal(ks[0], (C, C), jnp.float32)           # (Cin, Cout)
    w2 = 0.1 * jax.random.normal(ks[1], (3, 3, C, C), jnp.float32)     # (kh,kw,Cin,Cout)
    w3 = 0.3 * jax.random.normal(ks[2], (C, C), jnp.float32)           # (Cin, Cout)

    s1, b1 = bn_fold(ks[3], ks[4], ks[5], ks[6])
    s2, b2 = bn_fold(ks[7], ks[8], ks[9], ks[10])
    s3, b3 = bn_fold(ks[11], ks[3], ks[5], ks[7])
    return dict(w1=w1, w2=w2, w3=w3, s1=s1, b1=b1, s2=s2, b2=b2, s3=s3, b3=b3)


if __name__ == "__main__":
    key = jax.random.PRNGKey(0)
    kx, kp = jax.random.split(key)

    # stride=1 path requires in_planes == out_planes; W*C = 128 -> lane-dense.
    N, H, W, C = 2, 16, 16, 8
    x = jax.random.normal(kx, (N, H, W, C), jnp.float32)     # NHWC-native, no transposes
    params = make_params(kp, C)

    # One-time weight expansion (model-load time), then jitted forward.
    expanded = expand_inv_bottleneck_params(params, W, C)
    fwd = jax.jit(inv_bottleneck_pallas)

    out = jax.block_until_ready(fwd(x, expanded))

    ref = inv_bottleneck_ref(x, params)
    assert out.shape == (N, H, W, C)
    err = jnp.max(jnp.abs(out - ref))
    # bf16 MXU operands (f32 accumulation) -> loosened tolerance vs. pure-f32.
    assert jnp.allclose(out, ref, rtol=3e-2, atol=3e-2), f"max err {err}"
    print("KERNEL_OK")
</pallas_src>

<mosaic_0001>
module attributes {stable_mosaic.version = 11 : i64} {
  func.func @inv_bottleneck_kernel(%arg0: i32, %arg1: memref<1x16x128xf32, #tpu.memory_space<vmem>>, %arg2: memref<128x128xbf16, #tpu.memory_space<vmem>>, %arg3: memref<384x128xbf16, #tpu.memory_space<vmem>>, %arg4: memref<128x128xbf16, #tpu.memory_space<vmem>>, %arg5: memref<3x128xf32, #tpu.memory_space<vmem>>, %arg6: memref<1x16x128xf32, #tpu.memory_space<vmem>>) attributes {dimension_semantics = [#tpu.dimension_semantics<parallel>], iteration_bounds = array<i64: 2>, scalar_prefetch = 0 : i64, scratch_operands = 0 : i64, tpu.core_type = #tpu.core_type<tc>, window_params = [{transform_indices = @transform_0, window_bounds = array<i64: 1, 16, 128>}, {pipeline_mode = #tpu.pipeline_mode<synchronous>, transform_indices = @transform_1, window_bounds = array<i64: 128, 128>}, {pipeline_mode = #tpu.pipeline_mode<synchronous>, transform_indices = @transform_2, window_bounds = array<i64: 384, 128>}, {pipeline_mode = #tpu.pipeline_mode<synchronous>, transform_indices = @transform_3, window_bounds = array<i64: 128, 128>}, {pipeline_mode = #tpu.pipeline_mode<synchronous>, transform_indices = @transform_4, window_bounds = array<i64: 3, 128>}, {transform_indices = @transform_5, window_bounds = array<i64: 1, 16, 128>}]} {
    %c0 = arith.constant 0 : index
    %c0_0 = arith.constant 0 : index
    %0 = vector.load %arg5[%c0, %c0_0] : memref<3x128xf32, #tpu.memory_space<vmem>>, vector<1x128xf32>
    %c1 = arith.constant 1 : index
    %c0_1 = arith.constant 0 : index
    %1 = vector.load %arg5[%c1, %c0_1] : memref<3x128xf32, #tpu.memory_space<vmem>>, vector<1x128xf32>
    %c2 = arith.constant 2 : index
    %c0_2 = arith.constant 0 : index
    %2 = vector.load %arg5[%c2, %c0_2] : memref<3x128xf32, #tpu.memory_space<vmem>>, vector<1x128xf32>
    %c0_3 = arith.constant 0 : index
    %c0_4 = arith.constant 0 : index
    %c0_5 = arith.constant 0 : index
    %3 = vector.load %arg1[%c0_3, %c0_4, %c0_5] : memref<1x16x128xf32, #tpu.memory_space<vmem>>, vector<1x16x128xf32>
    %4 = vector.shape_cast %3 : vector<1x16x128xf32> to vector<16x128xf32>
    %5 = arith.truncf %4 : vector<16x128xf32> to vector<16x128xbf16>
    %c0_6 = arith.constant 0 : index
    %c0_7 = arith.constant 0 : index
    %6 = vector.load %arg2[%c0_6, %c0_7] : memref<128x128xbf16, #tpu.memory_space<vmem>>, vector<128x128xbf16>
    %cst = arith.constant dense<0.000000e+00> : vector<16x128xf32>
    %7 = tpu.matmul %5, %6, %cst {dimension_numbers = #tpu.dot_dimension_numbers<[1], [0], [0], [1], [0, 0, 1, 1], [], []>} : vector<16x128xbf16>, vector<128x128xbf16>, vector<16x128xf32> -> vector<16x128xf32>
    %8 = vector.broadcast %0 : vector<1x128xf32> to vector<16x128xf32>
    %9 = arith.addf %7, %8 : vector<16x128xf32>
    %cst_8 = arith.constant 0.000000e+00 : f32
    %10 = vector.broadcast %cst_8 : f32 to vector<16x128xf32>
    %11 = arith.maximumf %9, %10 : vector<16x128xf32>
    %12 = tpu.iota {dimensions = array<i32: 0>} : vector<16x1xi32>
    %c16_i32 = arith.constant 16 : i32
    %c0_i32 = arith.constant 0 : i32
    %13 = arith.cmpi eq, %c16_i32, %c0_i32 : i32
    %c1_i32 = arith.constant 1 : i32
    %14 = arith.select %13, %c1_i32, %c16_i32 : i32
    %15 = vector.broadcast %14 : i32 to vector<16x1xi32>
    %16 = arith.remsi %12, %15 : vector<16x1xi32>
    %c0_i32_9 = arith.constant 0 : i32
    %17 = vector.broadcast %c0_i32_9 : i32 to vector<16x1xi32>
    %18 = arith.cmpi ne, %16, %17 : vector<16x1xi32>
    %c0_i32_10 = arith.constant 0 : i32
    %19 = vector.broadcast %c0_i32_10 : i32 to vector<16x1xi32>
    %20 = arith.cmpi slt, %16, %19 : vector<16x1xi32>
    %c0_i32_11 = arith.constant 0 : i32
    %21 = arith.cmpi slt, %14, %c0_i32_11 : i32
    %22 = vector.broadcast %21 : i1 to vector<16x1xi1>
    %23 = vector.broadcast %22 : vector<16x1xi1> to vector<16x1xi1>
    %24 = arith.xori %20, %23 : vector<16x1xi1>
    %25 = arith.andi %24, %18 : vector<16x1xi1>
    %26 = vector.broadcast %14 : i32 to vector<16x1xi32>
    %27 = arith.addi %16, %26 : vector<16x1xi32>
    %28 = arith.select %25, %27, %16 : vector<16x1xi1>, vector<16x1xi32>
    %c0_i32_12 = arith.constant 0 : i32
    %29 = vector.broadcast %c0_i32_12 : i32 to vector<16x1xi32>
    %30 = arith.cmpi eq, %28, %29 : vector<16x1xi32>
    %c1_i32_13 = arith.constant 1 : i32
    %31 = tpu.dynamic_rotate %11 by %c1_i32_13 dim 0 : vector<16x128xf32>, i32 -> vector<16x128xf32>
    %cst_14 = arith.constant 0.000000e+00 : f32
    %32 = vector.shape_cast %30 : vector<16x1xi1> to vector<16x1xi1>
    %33 = vector.broadcast %32 : vector<16x1xi1> to vector<16x128xi1>
    %34 = vector.broadcast %cst_14 : f32 to vector<16x128xf32>
    %35 = arith.select %33, %34, %31 : vector<16x128xi1>, vector<16x128xf32>
    %c15_i32 = arith.constant 15 : i32
    %36 = vector.broadcast %c15_i32 : i32 to vector<16x1xi32>
    %37 = arith.cmpi eq, %28, %36 : vector<16x1xi32>
    %c15_i32_15 = arith.constant 15 : i32
    %38 = tpu.dynamic_rotate %11 by %c15_i32_15 dim 0 : vector<16x128xf32>, i32 -> vector<16x128xf32>
    %cst_16 = arith.constant 0.000000e+00 : f32
    %39 = vector.shape_cast %37 : vector<16x1xi1> to vector<16x1xi1>
    %40 = vector.broadcast %39 : vector<16x1xi1> to vector<16x128xi1>
    %41 = vector.broadcast %cst_16 : f32 to vector<16x128xf32>
    %42 = arith.select %40, %41, %38 : vector<16x128xi1>, vector<16x128xf32>
    %43 = arith.truncf %35 : vector<16x128xf32> to vector<16x128xbf16>
    %44 = arith.truncf %11 : vector<16x128xf32> to vector<16x128xbf16>
    %45 = arith.truncf %42 : vector<16x128xf32> to vector<16x128xbf16>
    %46 = tpu.concatenate %43, %44, %45 in 1 : vector<16x128xbf16>, vector<16x128xbf16>, vector<16x128xbf16> -> vector<16x384xbf16>
    %c0_17 = arith.constant 0 : index
    %c0_18 = arith.constant 0 : index
    %47 = vector.load %arg3[%c0_17, %c0_18] : memref<384x128xbf16, #tpu.memory_space<vmem>>, vector<384x128xbf16>
    %cst_19 = arith.constant dense<0.000000e+00> : vector<16x128xf32>
    %48 = tpu.matmul %46, %47, %cst_19 {dimension_numbers = #tpu.dot_dimension_numbers<[1], [0], [0], [1], [0, 0, 1, 1], [], []>} : vector<16x384xbf16>, vector<384x128xbf16>, vector<16x128xf32> -> vector<16x128xf32>
    %49 = vector.broadcast %1 : vector<1x128xf32> to vector<16x128xf32>
    %50 = arith.addf %48, %49 : vector<16x128xf32>
    %cst_20 = arith.constant 0.000000e+00 : f32
    %51 = vector.broadcast %cst_20 : f32 to vector<16x128xf32>
    %52 = arith.maximumf %50, %51 : vector<16x128xf32>
    %53 = arith.truncf %52 : vector<16x128xf32> to vector<16x128xbf16>
    %c0_21 = arith.constant 0 : index
    %c0_22 = arith.constant 0 : index
    %54 = vector.load %arg4[%c0_21, %c0_22] : memref<128x128xbf16, #tpu.memory_space<vmem>>, vector<128x128xbf16>
    %cst_23 = arith.constant dense<0.000000e+00> : vector<16x128xf32>
    %55 = tpu.matmul %53, %54, %cst_23 {dimension_numbers = #tpu.dot_dimension_numbers<[1], [0], [0], [1], [0, 0, 1, 1], [], []>} : vector<16x128xbf16>, vector<128x128xbf16>, vector<16x128xf32> -> vector<16x128xf32>
    %56 = vector.broadcast %2 : vector<1x128xf32> to vector<16x128xf32>
    %57 = arith.addf %55, %56 : vector<16x128xf32>
    %c0_24 = arith.constant 0 : index
    %c0_25 = arith.constant 0 : index
    %c0_26 = arith.constant 0 : index
    %58 = vector.load %arg1[%c0_24, %c0_25, %c0_26] : memref<1x16x128xf32, #tpu.memory_space<vmem>>, vector<1x16x128xf32>
    %59 = vector.shape_cast %58 : vector<1x16x128xf32> to vector<16x128xf32>
    %60 = arith.addf %57, %59 : vector<16x128xf32>
    %cst_27 = arith.constant 0.000000e+00 : f32
    %61 = vector.broadcast %cst_27 : f32 to vector<16x128xf32>
    %62 = arith.maximumf %60, %61 : vector<16x128xf32>
    %63 = vector.shape_cast %62 : vector<16x128xf32> to vector<1x16x128xf32>
    %c0_28 = arith.constant 0 : index
    %c0_29 = arith.constant 0 : index
    %c0_30 = arith.constant 0 : index
    %64 = vector.load %arg6[%c0_28, %c0_29, %c0_30] : memref<1x16x128xf32, #tpu.memory_space<vmem>>, vector<1x16x128xf32>
    tpu.vector_store %arg6[%c0_28, %c0_29, %c0_30], %63 {strides = array<i32>} : memref<1x16x128xf32, #tpu.memory_space<vmem>>, vector<1x16x128xf32>,
    return
  }
  func.func @transform_0(%arg0: i32) -> (i32, i32, i32) {
    %c0_i32 = arith.constant 0 : i32
    %c0_i32_0 = arith.constant 0 : i32
    %c0_i32_1 = arith.constant 0 : i32
    return %arg0, %c0_i32, %c0_i32_0 : i32, i32, i32
  }
  func.func @transform_1(%arg0: i32) -> (i32, i32) {
    %c0_i32 = arith.constant 0 : i32
    %c0_i32_0 = arith.constant 0 : i32
    %c0_i32_1 = arith.constant 0 : i32
    return %c0_i32, %c0_i32_0 : i32, i32
  }
  func.func @transform_2(%arg0: i32) -> (i32, i32) {
    %c0_i32 = arith.constant 0 : i32
    %c0_i32_0 = arith.constant 0 : i32
    %c0_i32_1 = arith.constant 0 : i32
    return %c0_i32, %c0_i32_0 : i32, i32
  }
  func.func @transform_3(%arg0: i32) -> (i32, i32) {
    %c0_i32 = arith.constant 0 : i32
    %c0_i32_0 = arith.constant 0 : i32
    %c0_i32_1 = arith.constant 0 : i32
    return %c0_i32, %c0_i32_0 : i32, i32
  }
  func.func @transform_4(%arg0: i32) -> (i32, i32) {
    %c0_i32 = arith.constant 0 : i32
    %c0_i32_0 = arith.constant 0 : i32
    %c0_i32_1 = arith.constant 0 : i32
    return %c0_i32, %c0_i32_0 : i32, i32
  }
  func.func @transform_5(%arg0: i32) -> (i32, i32, i32) {
    %c0_i32 = arith.constant 0 : i32
    %c0_i32_0 = arith.constant 0 : i32
    %c0_i32_1 = arith.constant 0 : i32
    return %arg0, %c0_i32, %c0_i32_0 : i32, i32, i32
  }
}

</mosaic_0001>

<bundles_post_ra>
// kernel: inv_bottleneck_pallas.1
= control target key start
LH: loop header
LB: loop body
LE: loop exit
PB: predicated region body
PF: predicated region fallthrough
CT: control target
= control target key end

     0   :  { %s1117_s18 = smov 0   ;;  %s1308_s0 = inlined_call_operand.vmem [shape: f32[2,16,128], index: 0, kind: input, shape index: {}]   ;;  %s1309_s1 = inlined_call_operand.vmem [shape: bf16[128,128], index: 1, kind: input, shape index: {}]   ;;  %s1310_s2 = inlined_call_operand.vmem [shape: bf16[384,128], index: 2, kind: input, shape index: {}]   ;;  %s1311_s3 = inlined_call_operand.vmem [shape: bf16[128,128], index: 3, kind: input, shape index: {}]   ;;  %s1312_s4 = inlined_call_operand.vmem [shape: f32[3,128], index: 4, kind: input, shape index: {}]   ;;  %s1313_s5 = inlined_call_operand.vmem [shape: f32[2,16,128], index: 5, kind: output, shape index: {}]  }
   0x1 LB: > { %s850_s19 = sadd.s32 4294967295, %s1082_s18   ;;  %p854_p0 = scmp.ge.s32.totalorder %s1082_s18, 1  ;;  %s1082_s18 = sphi %s1117_s18, %s15_s18  }
   0x2   : > { %p187_p1 = scmp.lt.s32.totalorder %s1082_s18, 3 }
   0x4   : > { %p188_p2 = pnand %p854_p0, %p187_p1 }
   0x5   : > { %p215_p3 = scmp.lt.s32.totalorder (!%p188_p2), %s850_s19, 1 }
   0x6   : > { %191 = sbr.rel (%p188_p2) target bundleno = 663 (0x297), region = 40 }
   0xb   : > { %v1036_v0 = vld [vmem:[%s1309_s1 + $0x38] sm:$0xff]   ;;  %v1084_v1 = vmov 0.0   ;;  %v1037_v2 = vld [vmem:[%s1309_s1 + $0x30] sm:$0xff]   ;;  %vm1085_vm0 = vmmov 0   ;;  %v1038_v3 = vld [vmem:[%s1309_s1 + $0x28] sm:$0xff]   ;;  %s1315_s19 = smov (!%p215_p3, %s850_s19), 1  ;;  %v343_v36 = vlaneseq }
   0xc   : > { %965 = vmatprep.subr.bf16.mxu0 %v1084_v1  ;;  %981 = vmatprep.mubr.msk.bf16.mxu0 %vm1085_vm0, %v1084_v1  ;;  %v1039_v4 = vld [vmem:[%s1309_s1 + $0x20] sm:$0xff]   ;;  %v1044_v5 = vld [vmem:[%s1310_s2 + $0x78] sm:$0xff]   ;;  %v1047_v7 = vld [vmem:[%s1310_s2 + $0x70] sm:$0xff]   ;;  %s912_s21 = sshll.u32 %s1315_s19, 4  ;;  %vm1086_vm5 = vmmov 1  }
   0xd   : > { %966 = vmatpush3.bf16.msra.mxu0 %v1036_v0  ;;  %v1045_v6 = vld [vmem:[%s1310_s2 + $0x38] sm:$0xff]   ;;  %925 = vmatprep.subr.bf16.mxu1 %v1044_v5  ;;  %v1048_v8 = vld [vmem:[%s1310_s2 + $0x30] sm:$0xff]   ;;  %v1050_v10 = vld [vmem:[%s1310_s2 + $0x68] sm:$0xff]   ;;  %s219_s28 = scalar_lea.vmem %s1308_s0, %s912_s21  ;;  %v344_v37 = vshrl.u32 %v343_v36, 7  ;;  %s224_s23 = scalar_lea.vmem %s1313_s5, %s912_s21 }
   0xe   : > { %967 = vmatprep.subr.bf16.mxu0 %v1084_v1  ;;  %926 = vmatpush3.bf16.msra.mxu1 %v1045_v6  ;;  %v1040_v9 = vld [vmem:[%s1309_s1 + $0x18] sm:$0xff]   ;;  %v1051_v11 = vld [vmem:[%s1310_s2 + $0x28] sm:$0xff]   ;;  %v1041_v12 = vld [vmem:[%s1309_s1 + $0x10] sm:$0xff]  }
   0xf   : > { %927 = vmatprep.subr.bf16.mxu1 %v1047_v7  ;;  %v1053_v13 = vld [vmem:[%s1310_s2 + $0x60] sm:$0xff]   ;;  %v1056_v15 = vld [vmem:[%s1310_s2 + $0x58] sm:$0xff]   ;;  %v1042_v16 = vld [vmem:[%s1309_s1 + $0x8] sm:$0xff]   ;;  %v345_v40 = vadd.s32 8, %v344_v37  ;;  %v350_v43 = vand.u32 15, %v344_v37  ;;  %vm387_vm2 = vcmp.lt.s32.totalorder %v344_v37, 7 }
  0x10   : > { %v1054_v14 = vld [vmem:[%s1310_s2 + $0x20] sm:$0xff]   ;;  %v1057_v17 = vld [vmem:[%s1310_s2 + $0x18] sm:$0xff]   ;;  %v1198_v20 = vld [vmem:[%s219_s28 + $0x8] sm:$0xff]  ;;  %vm374_vm3 = vcmp.lt.s32.totalorder %v344_v37, 1 }
  0x11   : > { %968 = vmatpush3.bf16.msra.mxu0 %v1037_v2  ;;  %v1043_v18 = vld [vmem:[%s1309_s1] sm:$0xff]   ;;  %v1046_v21 = vld [vmem:[%s1310_s2 + $0xb8] sm:$0xff]   ;;  %v1049_v23 = vld [vmem:[%s1310_s2 + $0xb0] sm:$0xff]   ;;  %v357_v46 = vand.u32 15, %v345_v40  ;;  %vm914_vm1 = vcmp.ne.s32.totalorder %v350_v43, 0 }
  0x12   : > { %969 = vmatprep.subr.bf16.mxu0 %v1084_v1  ;;  %928 = vmatpush3.bf16.msra.mxu1 %v1048_v8  ;;  %v1196_v19 = vld [vmem:[%s219_s28] sm:$0xff]  ;;  %v1052_v24 = vld [vmem:[%s1310_s2 + $0xa8] sm:$0xff]   ;;  %v1058_v26 = vld [vmem:[%s1310_s2 + $0x98] sm:$0xff]  }
  0x13   : > { %929 = vmatprep.subr.bf16.mxu1 %v1050_v10  ;;  %v231_v22 = vpack.c.bf16 %v1198_v20, %v1196_v19  ;;  %v1055_v25 = vld [vmem:[%s1310_s2 + $0xa0] sm:$0xff]   ;;  %v1059_v27 = vld [vmem:[%s1310_s2 + $0x50] sm:$0xff]   ;;  %v1062_v30 = vld [vmem:[%s1310_s2 + $0x48] sm:$0xff]   ;;  %vm915_vm4 = vcmp.ne.s32.totalorder %v357_v46, 15 }
  0x14   : > { %v1060_v28 = vld [vmem:[%s1310_s2 + $0x10] sm:$0xff]   ;;  %v1063_v31 = vld [vmem:[%s1310_s2 + $0x8] sm:$0xff]   ;;  %v1065_v33 = vld [vmem:[%s1310_s2 + $0x40] sm:$0xff]  }
  0x15   : > { %970 = vmatpush3.bf16.msra.mxu0 %v1038_v3  ;;  %v1061_v29 = vld [vmem:[%s1310_s2 + $0x90] sm:$0xff]   ;;  %v1064_v32 = vld [vmem:[%s1310_s2 + $0x88] sm:$0xff]   ;;  %v1066_v34 = vld [vmem:[%s1310_s2] sm:$0xff]  }
  0x16   : > { %971 = vmatprep.subr.bf16.mxu0 %v1084_v1  ;;  %930 = vmatpush3.bf16.msra.mxu1 %v1051_v11  ;;  %v1067_v35 = vld [vmem:[%s1310_s2 + $0x80] sm:$0xff]   ;;  %vm894_vm6 = vmpackc.low %vm1086_vm5, %vm914_vm1  ;;  %v1068_v59 = vld [vmem:[%s1311_s3 + $0x38] sm:$0xff]  }
  0x17   : > { %931 = vmatprep.subr.bf16.mxu1 %v1053_v13  ;;  %v859_v38 = vld [vmem:[%s1312_s4] ss:$0 sm:$0xff]  ;;  %vm898_vm7 = vmpackc.low %vm915_vm4, %vm1086_vm5  ;;  %v1069_v62 = vld [vmem:[%s1311_s3 + $0x30] sm:$0xff]  }
  0x18   : > { %v1070_v63 = vld [vmem:[%s1311_s3 + $0x28] sm:$0xff]   ;;  %v1071_v0 = vld [vmem:[%s1311_s3 + $0x20] sm:$0xff]   ;;  %v1072_v2 = vld [vmem:[%s1311_s3 + $0x18] sm:$0xff]  }
  0x19   : > { %972 = vmatpush3.bf16.msra.mxu0 %v1039_v4  ;;  %v1073_v3 = vld [vmem:[%s1311_s3 + $0x10] sm:$0xff]   ;;  %v1074_v4 = vld [vmem:[%s1311_s3 + $0x8] sm:$0xff]   ;;  %v1075_v5 = vld [vmem:[%s1311_s3] sm:$0xff]  }
  0x1a   : > { %973 = vmatprep.subr.bf16.mxu0 %v1084_v1  ;;  %932 = vmatpush3.bf16.msra.mxu1 %v1054_v14  ;;  %v868_v8 = vld [vmem:[%s1312_s4 + $0x1] ss:$0 sm:$0xff] }
  0x1b   : > { %933 = vmatprep.subr.bf16.mxu1 %v1056_v15 }
  0x1d   : > { %974 = vmatpush3.bf16.msra.mxu0 %v1040_v9 }
  0x1e   : > { %975 = vmatprep.subr.bf16.mxu0 %v1084_v1  ;;  %934 = vmatpush3.bf16.msra.mxu1 %v1057_v17 }
  0x1f   : > { %935 = vmatprep.subr.bf16.mxu1 %v1059_v27 }
  0x21   : > { %976 = vmatpush3.bf16.msra.mxu0 %v1041_v12 }
  0x22   : > { %977 = vmatprep.subr.bf16.mxu0 %v1084_v1  ;;  %936 = vmatpush3.bf16.msra.mxu1 %v1060_v28 }
  0x23   : > { %937 = vmatprep.subr.bf16.mxu1 %v1062_v30 }
  0x25   : > { %978 = vmatpush3.bf16.msra.mxu0 %v1042_v16 }
  0x26   : > { %979 = vmatprep.subr.bf16.mxu0 %v1084_v1  ;;  %938 = vmatpush3.bf16.msra.mxu1 %v1063_v31 }
  0x27   : > { %939 = vmatprep.subr.bf16.mxu1 %v1065_v33 }
  0x29   : > { %980 = vmatpush3.bf16.msra.mxu0 %v1043_v18 }
  0x2a   : > { %985 = vmatprep.subr.bf16.mxu0 %v1084_v1  ;;  %940 = vmatpush3.bf16.msra.mxu1 %v1066_v34 }
  0x2b   : > { %1005 = vmatprep.subr.bf16.mxu1 %v1084_v1 }
  0x2c   : > { %982 = vmatmul.mubr.bf16.vlgmr.msra.gmra.mxu0 %v231_v22 }
  0x2d   : > { %986 = vmatpush3.bf16.msra.mxu0 %v1046_v21  ;;  %1001 = vmatprep.mubr.msk.bf16.mxu0 %vm1085_vm0, %v1084_v1 }
  0x2e   : > { %987 = vmatprep.subr.bf16.mxu0 %v1084_v1 }
  0x31   : > { %988 = vmatpush3.bf16.msra.mxu0 %v1049_v23 }
  0x32   : > { %989 = vmatprep.subr.bf16.mxu0 %v1084_v1 }
  0x35   : > { %990 = vmatpush3.bf16.msra.mxu0 %v1052_v24 }
  0x36   : > { %991 = vmatprep.subr.bf16.mxu0 %v1084_v1 }
  0x39   : > { %992 = vmatpush3.bf16.msra.mxu0 %v1055_v25  ;;  %v901_v25 = vld [vmem:[%s1312_s4 + $0x2] ss:$0 sm:$0xff] }
  0x3a   : > { %993 = vmatprep.subr.bf16.mxu0 %v1084_v1 }
  0x3d   : > { %994 = vmatpush3.bf16.msra.mxu0 %v1058_v26 }
  0x3e   : > { %995 = vmatprep.subr.bf16.mxu0 %v1084_v1 }
  0x41   : > { %996 = vmatpush3.bf16.msra.mxu0 %v1061_v29 }
  0x42   : > { %997 = vmatprep.subr.bf16.mxu0 %v1084_v1 }
  0x45   : > { %998 = vmatpush3.bf16.msra.mxu0 %v1064_v32 }
  0x46   : > { %999 = vmatprep.subr.bf16.mxu0 %v1084_v1 }
  0x49   : > { %1000 = vmatpush3.bf16.msra.mxu0 %v1067_v35 }
  0xec   : > { %v334_v39 = vpop.f32.mrf.mxu0 }
  0xed   : > { %v335_v41 = vadd.f32 %v859_v38, %v334_v39 }
  0xee   : > { %v983_v42 = vpop.f32.mrf.mxu0 }
  0xef   : > { %v341_v44 = vmax.f32 %v335_v41, 0.0 }
  0xf0   : > { %v337_v45 = vpop.f32.mrf.mxu0 }
  0xf1   : > { %v338_v47 = vadd.f32 %v859_v38, %v337_v45  ;;  %v372_v50 = vrot.slane %v341_v44, 7  ;;  %v385_v51 = vrot.slane %v341_v44, 1 }
  0xf2   : > { %v984_v48 = vpop.f32.mrf.mxu0 }
  0xf3   : > { %v342_v49 = vmax.f32 %v338_v47, 0.0 }
  0xf5   : > { %v373_v52 = vrot.slane %v342_v49, 7  ;;  %v386_v53 = vrot.slane %v342_v49, 1  ;;  %v397_v54 = vpack.c.bf16 %v342_v49, %v341_v44 }
  0xf7   : > { %v388_v55 = vsel %vm387_vm2, %v385_v51, %v386_v53  ;;  %v389_v56 = vsel %vm387_vm2, %v386_v53, %v385_v51  ;;  %627 = vmatprep.mubr.bf16.mxu1 %v397_v54  ;;  %v375_v57 = vsel %vm374_vm3, %v372_v50, %v373_v52  ;;  %v376_v58 = vsel %vm374_vm3, %v373_v52, %v372_v50 }
  0xf8   : > { %v899_v60 = vpack.c.bf16 %v389_v56, %v388_v55  ;;  %v895_v61 = vpack.c.bf16 %v375_v57, %v376_v58 }
  0xfa   : > { %896 = vmatmul.mubr.msk.bf16.vlgmr.msra.gmra.mxu1 %vm894_vm6, %v895_v61  ;;  %1002 = vmatmul.mubr.msk.bf16.vlgmr.msra.gmra.mxu0 %vm898_vm7, %v899_v60 }
  0xfb   : > { %1006 = vmatpush3.bf16.msra.mxu1 %v1068_v59  ;;  %1021 = vmatprep.mubr.msk.bf16.mxu1 %vm1085_vm0, %v1084_v1 }
  0xfc   : > { %1007 = vmatprep.subr.bf16.mxu1 %v1084_v1 }
  0xff   : > { %1008 = vmatpush3.bf16.msra.mxu1 %v1069_v62 }
 0x100   : > { %1009 = vmatprep.subr.bf16.mxu1 %v1084_v1 }
 0x103   : > { %1010 = vmatpush3.bf16.msra.mxu1 %v1070_v63 }
 0x104   : > { %1011 = vmatprep.subr.bf16.mxu1 %v1084_v1 }
 0x107   : > { %1012 = vmatpush3.bf16.msra.mxu1 %v1071_v0 }
 0x108   : > { %1013 = vmatprep.subr.bf16.mxu1 %v1084_v1 }
 0x10b   : > { %1014 = vmatpush3.bf16.msra.mxu1 %v1072_v2 }
 0x10c   : > { %1015 = vmatprep.subr.bf16.mxu1 %v1084_v1 }
 0x10f   : > { %1016 = vmatpush3.bf16.msra.mxu1 %v1073_v3 }
 0x110   : > { %1017 = vmatprep.subr.bf16.mxu1 %v1084_v1 }
 0x113   : > { %1018 = vmatpush3.bf16.msra.mxu1 %v1074_v4 }
 0x114   : > { %1019 = vmatprep.subr.bf16.mxu1 %v1084_v1 }
 0x117   : > { %1020 = vmatpush3.bf16.msra.mxu1 %v1075_v5 }
 0x1ba   : > { %v941_v6 = vpop.f32.mrf.mxu1  ;;  %v670_v7 = vpop.f32.mrf.mxu0 }
 0x1bc   : > { %v942_v9 = vpop.f32.mrf.mxu1  ;;  %v1003_v10 = vpop.f32.mrf.mxu0 }
 0x1bd   : > { %v943_v11 = vadd.f32 %v942_v9, %v941_v6 }
 0x1be   : > { %v944_v12 = vpop.f32.mrf.mxu1  ;;  %v673_v13 = vpop.f32.mrf.mxu0 }
 0x1bf   : > { %v630_v14 = vadd.f32 %v943_v11, %v868_v8 }
 0x1c0   : > { %v945_v15 = vpop.f32.mrf.mxu1  ;;  %v1004_v1 = vpop.f32.mrf.mxu0 }
 0x1c1   : > { %v946_v16 = vadd.f32 %v945_v15, %v944_v12  ;;  %v671_v17 = vadd.f32 %v670_v7, %v630_v14 }
 0x1c3   : > { %v633_v18 = vadd.f32 %v946_v16, %v868_v8  ;;  %v677_v22 = vmax.f32 %v671_v17, 0.0 }
 0x1c5   : > { %v674_v21 = vadd.f32 %v673_v13, %v633_v18 }
 0x1c7   : > { %v678_v23 = vmax.f32 %v674_v21, 0.0 }
 0x1c9   : > { %v679_v24 = vpack.c.bf16 %v678_v23, %v677_v22 }
 0x1cb   : > { %1022 = vmatmul.mubr.bf16.vlgmr.msra.gmra.mxu1 %v679_v24 }
 0x28b   : > { %v782_v26 = vpop.f32.mrf.mxu1 }
 0x28c   : > { %v783_v27 = vadd.f32 %v901_v25, %v782_v26 }
 0x28d   : > { %v1023_v28 = vpop.f32.mrf.mxu1 }
 0x28e   : > { %v789_v29 = vadd.f32 %v783_v27, %v1196_v19 }
 0x28f   : > { %v785_v30 = vpop.f32.mrf.mxu1 }
 0x290   : > { %v791_v31 = vmax.f32 %v789_v29, 0.0  ;;  %v786_v32 = vadd.f32 %v901_v25, %v785_v30 }
 0x291   : > { %v1024_v33 = vpop.f32.mrf.mxu1 }
 0x292   : > { %793 = vst [vmem:[%s224_s23] sm:$0xff] %v791_v31  ;;  %v790_v34 = vadd.f32 %v786_v32, %v1198_v20 }
 0x294   : > { %v792_v35 = vmax.f32 %v790_v34, 0.0 }
 0x296   : > { %794 = vst [vmem:[%s224_s23 + $0x8] sm:$0xff] %v792_v35 }
 0x297 PF: > { %s15_s18 = sadd.s32 1, %s1082_s18  }
 0x298   : > { %p12_p4 = scmp.ge.s32.totalorder %s15_s18, 4  }
 0x29a   :  { %14 = sbr.rel (!%p12_p4) target bundleno = 1 (0x1), region = 70 }

</bundles_post_ra>
